<compile_context>
chip_gen: v5e
topology: v5e:2x2
jax: 0.10.0
libtpu: 0.0.40
codegen_flags: <defaults>
</compile_context>

<pallas_src>
import functools

import jax
import jax.numpy as jnp
from jax.experimental import pallas as pl
from jax.experimental.pallas import tpu as pltpu

LANE = 128
SUBLANE_BF16 = 16            # bf16 packs 2 rows/sublane -> native (16, 128) tile
NEG_INF = jnp.float32(-1e30)
MAX_TB = 2048                # amortizes ~0.35us per-grid-step overhead; ~1.3MB VMEM


def _round_up(n, m):
    return ((n + m - 1) // m) * m


def policy_net_kernel(x_ref, w1_ref, b1_ref, w2_ref, b2_ref, w3_ref, b3_ref, out_ref):
    # x arrives f32 straight from HBM; cast to bf16 in-kernel (free VPU work under
    # the DMA) instead of a separate wrapper-side XLA cast pass over x.
    x = x_ref[...].astype(jnp.bfloat16)

    # Linear(input_dim, 32) + ReLU   (accumulate in f32, bias/elementwise in f32)
    h1 = jnp.dot(x, w1_ref[...], preferred_element_type=jnp.float32) + b1_ref[...]
    h1 = jnp.maximum(h1, 0.0)

    # Linear(32, 32) + ReLU
    h2 = jnp.dot(h1.astype(jnp.bfloat16), w2_ref[...],
                 preferred_element_type=jnp.float32) + b2_ref[...]
    h2 = jnp.maximum(h2, 0.0)

    # Linear(32, out_pad). Padded output columns carry a -1e30 bias (their w3
    # columns are exactly zero), so they contribute exactly 0 to the softmax.
    logits = jnp.dot(h2.astype(jnp.bfloat16), w3_ref[...],
                     preferred_element_type=jnp.float32) + b3_ref[...]

    # Numerically stable Softmax(dim=-1) with an EXACT reciprocal (the approx EUP
    # reciprocal pushed row sums off by >2e-3); kernel is HBM-bound, divide is free.
    m = jnp.max(logits, axis=-1, keepdims=True)
    e = jnp.exp(logits - m)
    s = jnp.sum(e, axis=-1, keepdims=True)
    probs = e / s

    # bf16 store halves the lane-padded writeback traffic (dominant HBM cost) while
    # keeping the 128-lane store unmasked.
    out_ref[...] = probs.astype(out_ref.dtype)


def prepare_params(params):
    """One-time weight prep (hoisted out of the forward): bf16 casts and
    lane-padding of the output layer to a 128-wide slab with -1e30 pad biases."""
    w1, b1, w2, b2, w3, b3 = params
    hidden = w1.shape[1]
    out_dim = w3.shape[1]
    out_pad = _round_up(out_dim, LANE)
    w3p = jnp.zeros((hidden, out_pad), jnp.float32).at[:, :out_dim].set(w3)
    b3p = jnp.full((1, out_pad), NEG_INF, jnp.float32).at[:, :out_dim].set(b3)
    prepared = (w1.astype(jnp.bfloat16), b1.astype(jnp.float32),
                w2.astype(jnp.bfloat16), b2.astype(jnp.float32),
                w3p.astype(jnp.bfloat16), b3p)
    return jax.tree.map(jnp.asarray, prepared), out_dim


def _choose_tb(B):
    # Multiple of 16 (bf16 output sublane packing). Small batches: single step.
    if B <= 2 * SUBLANE_BF16:
        return _round_up(B, SUBLANE_BF16)
    # Large batches: guarantee >=2 grid steps so the "parallel" batch axis can be
    # sharded across v7x's 2 TensorCores, capped so per-step overhead stays amortized
    # and the double-buffered working set stays far under every chip's VMEM limit.
    return min(MAX_TB, _round_up((B + 1) // 2, SUBLANE_BF16))


@functools.partial(jax.jit, static_argnums=(2,))
def policy_network_forward(x, prepared_params, out_dim):
    """x: [B, input_dim] float32. Returns [B, out_dim] softmax probs (f32)."""
    w1b, b1, w2b, b2, w3b, b3p = prepared_params
    B, input_dim = x.shape
    out_pad = w3b.shape[1]

    TB = _choose_tb(B)
    B_pad = _round_up(B, TB)
    if B_pad != B:
        xp = jnp.zeros((B_pad, input_dim), x.dtype).at[:B, :].set(x)
    else:
        xp = x  # no wrapper-side pad pass when the tile divides the batch

    # Constant index maps keep the (tiny) weights/biases VMEM-resident across steps.
    resident = lambda a: pl.BlockSpec(a.shape, lambda i: (0, 0))

    out = pl.pallas_call(
        policy_net_kernel,
        out_shape=jax.ShapeDtypeStruct((B_pad, out_pad), jnp.bfloat16),
        grid_spec=pltpu.PrefetchScalarGridSpec(
            num_scalar_prefetch=0,
            grid=(B_pad // TB,),
            in_specs=[
                pl.BlockSpec((TB, input_dim), lambda i: (i, 0)),  # x: batch-tiled f32
                resident(w1b), resident(b1),
                resident(w2b), resident(b2),
                resident(w3b), resident(b3p),
            ],
            out_specs=pl.BlockSpec((TB, out_pad), lambda i: (i, 0)),
        ),
        compiler_params=pltpu.CompilerParams(
            dimension_semantics=("parallel",),  # batch steps shard across v7x's 2 TCs
        ),
    )(xp, w1b, b1, w2b, b2, w3b, b3p)

    # NOTE: consumers that can use the padded bf16 slab directly should take `out`
    # as-is; this slice+cast is purely for the nn.Module-shaped interface.
    return out[:B, :out_dim].astype(jnp.float32)


def policy_network_ref(x, params):
    """Pure-JAX f32 reference of the PyTorch module's forward."""
    w1, b1, w2, b2, w3, b3 = params
    h1 = jnp.maximum(x @ w1 + b1, 0.0)
    h2 = jnp.maximum(h1 @ w2 + b2, 0.0)
    return jax.nn.softmax(h2 @ w3 + b3, axis=-1)


def init_params(key, input_dim, hidden, max_output_dim):
    """Deterministic init mimicking nn.Linear's uniform(-1/sqrt(fan_in), ...)."""
    ks = jax.random.split(key, 6)

    def lin(kw, kb, fan_in, fan_out):
        bound = 1.0 / jnp.sqrt(float(fan_in))
        w = jax.random.uniform(kw, (fan_in, fan_out), jnp.float32, -bound, bound)
        b = jax.random.uniform(kb, (1, fan_out), jnp.float32, -bound, bound)
        return w, b

    w1, b1 = lin(ks[0], ks[1], input_dim, hidden)
    w2, b2 = lin(ks[2], ks[3], hidden, hidden)
    w3, b3 = lin(ks[4], ks[5], hidden, max_output_dim)
    return (w1, b1, w2, b2, w3, b3)


if __name__ == "__main__":
    key = jax.random.PRNGKey(0)
    k_in, k_param = jax.random.split(key)

    B = 2               # batch of observations
    input_dim = 16      # synthetic BlitzEnv observation size
    hidden = 32         # fixed by the module
    max_output_dim = 8  # action space size

    x = jax.random.normal(k_in, (B, input_dim), dtype=jnp.float32)
    params = init_params(k_param, input_dim, hidden, max_output_dim)
    prepared, out_dim = prepare_params(params)

    probs = policy_network_forward(x, prepared, out_dim)
    probs = jax.block_until_ready(probs)

    # sanity: shape, rows sum to 1 (exact reciprocal; bf16 output storage => ~2e-3
    # worst-case), and agreement with the f32 pure-JAX reference (bf16 MXU inputs).
    assert probs.shape == (B, max_output_dim)
    row_sums = jnp.sum(probs, axis=-1)
    assert bool(jnp.all(jnp.abs(row_sums - 1.0) < 1e-2))
    ref = policy_network_ref(x, params)
    assert bool(jnp.max(jnp.abs(probs - ref)) < 5e-2)

    print("KERNEL_OK")
</pallas_src>

<mosaic_0001>
module attributes {stable_mosaic.version = 11 : i64} {
  func.func @policy_net_kernel(%arg0: i32, %arg1: memref<16x16xf32, #tpu.memory_space<vmem>>, %arg2: memref<16x32xbf16, #tpu.memory_space<vmem>>, %arg3: memref<1x32xf32, #tpu.memory_space<vmem>>, %arg4: memref<32x32xbf16, #tpu.memory_space<vmem>>, %arg5: memref<1x32xf32, #tpu.memory_space<vmem>>, %arg6: memref<32x128xbf16, #tpu.memory_space<vmem>>, %arg7: memref<1x128xf32, #tpu.memory_space<vmem>>, %arg8: memref<16x128xbf16, #tpu.memory_space<vmem>>) attributes {dimension_semantics = [#tpu.dimension_semantics<parallel>], iteration_bounds = array<i64: 1>, scalar_prefetch = 0 : i64, scratch_operands = 0 : i64, tpu.core_type = #tpu.core_type<tc>, window_params = [{transform_indices = @transform_0, window_bounds = array<i64: 16, 16>}, {pipeline_mode = #tpu.pipeline_mode<synchronous>, transform_indices = @transform_1, window_bounds = array<i64: 16, 32>}, {pipeline_mode = #tpu.pipeline_mode<synchronous>, transform_indices = @transform_2, window_bounds = array<i64: 1, 32>}, {pipeline_mode = #tpu.pipeline_mode<synchronous>, transform_indices = @transform_3, window_bounds = array<i64: 32, 32>}, {pipeline_mode = #tpu.pipeline_mode<synchronous>, transform_indices = @transform_4, window_bounds = array<i64: 1, 32>}, {pipeline_mode = #tpu.pipeline_mode<synchronous>, transform_indices = @transform_5, window_bounds = array<i64: 32, 128>}, {pipeline_mode = #tpu.pipeline_mode<synchronous>, transform_indices = @transform_6, window_bounds = array<i64: 1, 128>}, {transform_indices = @transform_7, window_bounds = array<i64: 16, 128>}]} {
    %c0 = arith.constant 0 : index
    %c0_0 = arith.constant 0 : index
    %0 = vector.load %arg1[%c0, %c0_0] : memref<16x16xf32, #tpu.memory_space<vmem>>, vector<16x16xf32>
    %1 = arith.truncf %0 : vector<16x16xf32> to vector<16x16xbf16>
    %c0_1 = arith.constant 0 : index
    %c0_2 = arith.constant 0 : index
    %2 = vector.load %arg2[%c0_1, %c0_2] : memref<16x32xbf16, #tpu.memory_space<vmem>>, vector<16x32xbf16>
    %cst = arith.constant dense<0.000000e+00> : vector<16x32xf32>
    %3 = tpu.matmul %1, %2, %cst {dimension_numbers = #tpu.dot_dimension_numbers<[1], [0], [0], [1], [0, 0, 1, 1], [], []>} : vector<16x16xbf16>, vector<16x32xbf16>, vector<16x32xf32> -> vector<16x32xf32>
    %c0_3 = arith.constant 0 : index
    %c0_4 = arith.constant 0 : index
    %4 = vector.load %arg3[%c0_3, %c0_4] : memref<1x32xf32, #tpu.memory_space<vmem>>, vector<1x32xf32>
    %5 = vector.broadcast %4 : vector<1x32xf32> to vector<16x32xf32>
    %6 = arith.addf %3, %5 : vector<16x32xf32>
    %cst_5 = arith.constant 0.000000e+00 : f32
    %7 = vector.broadcast %cst_5 : f32 to vector<16x32xf32>
    %8 = arith.maximumf %6, %7 : vector<16x32xf32>
    %9 = arith.truncf %8 : vector<16x32xf32> to vector<16x32xbf16>
    %c0_6 = arith.constant 0 : index
    %c0_7 = arith.constant 0 : index
    %10 = vector.load %arg4[%c0_6, %c0_7] : memref<32x32xbf16, #tpu.memory_space<vmem>>, vector<32x32xbf16>
    %cst_8 = arith.constant dense<0.000000e+00> : vector<16x32xf32>
    %11 = tpu.matmul %9, %10, %cst_8 {dimension_numbers = #tpu.dot_dimension_numbers<[1], [0], [0], [1], [0, 0, 1, 1], [], []>} : vector<16x32xbf16>, vector<32x32xbf16>, vector<16x32xf32> -> vector<16x32xf32>
    %c0_9 = arith.constant 0 : index
    %c0_10 = arith.constant 0 : index
    %12 = vector.load %arg5[%c0_9, %c0_10] : memref<1x32xf32, #tpu.memory_space<vmem>>, vector<1x32xf32>
    %13 = vector.broadcast %12 : vector<1x32xf32> to vector<16x32xf32>
    %14 = arith.addf %11, %13 : vector<16x32xf32>
    %cst_11 = arith.constant 0.000000e+00 : f32
    %15 = vector.broadcast %cst_11 : f32 to vector<16x32xf32>
    %16 = arith.maximumf %14, %15 : vector<16x32xf32>
    %17 = arith.truncf %16 : vector<16x32xf32> to vector<16x32xbf16>
    %c0_12 = arith.constant 0 : index
    %c0_13 = arith.constant 0 : index
    %18 = vector.load %arg6[%c0_12, %c0_13] : memref<32x128xbf16, #tpu.memory_space<vmem>>, vector<32x128xbf16>
    %cst_14 = arith.constant dense<0.000000e+00> : vector<16x128xf32>
    %19 = tpu.matmul %17, %18, %cst_14 {dimension_numbers = #tpu.dot_dimension_numbers<[1], [0], [0], [1], [0, 0, 1, 1], [], []>} : vector<16x32xbf16>, vector<32x128xbf16>, vector<16x128xf32> -> vector<16x128xf32>
    %c0_15 = arith.constant 0 : index
    %c0_16 = arith.constant 0 : index
    %20 = vector.load %arg7[%c0_15, %c0_16] : memref<1x128xf32, #tpu.memory_space<vmem>>, vector<1x128xf32>
    %21 = vector.broadcast %20 : vector<1x128xf32> to vector<16x128xf32>
    %22 = arith.addf %19, %21 : vector<16x128xf32>
    %cst_17 = arith.constant dense<0xFF800000> : vector<16xf32>
    %23 = vector.multi_reduction <maximumf>, %22, %cst_17 [1] : vector<16x128xf32> to vector<16xf32>
    %24 = vector.shape_cast %23 : vector<16xf32> to vector<16x1xf32>
    %25 = vector.broadcast %24 : vector<16x1xf32> to vector<16x128xf32>
    %26 = arith.subf %22, %25 : vector<16x128xf32>
    %27 = math.exp %26 : vector<16x128xf32>
    %cst_18 = arith.constant dense<0.000000e+00> : vector<16xf32>
    %28 = vector.multi_reduction <add>, %27, %cst_18 [1] : vector<16x128xf32> to vector<16xf32>
    %29 = vector.shape_cast %28 : vector<16xf32> to vector<16x1xf32>
    %30 = vector.broadcast %29 : vector<16x1xf32> to vector<16x128xf32>
    %31 = arith.divf %27, %30 : vector<16x128xf32>
    %32 = arith.truncf %31 : vector<16x128xf32> to vector<16x128xbf16>
    %c0_19 = arith.constant 0 : index
    %c0_20 = arith.constant 0 : index
    %33 = vector.load %arg8[%c0_19, %c0_20] : memref<16x128xbf16, #tpu.memory_space<vmem>>, vector<16x128xbf16>
    tpu.vector_store %arg8[%c0_19, %c0_20], %32 {strides = array<i32>} : memref<16x128xbf16, #tpu.memory_space<vmem>>, vector<16x128xbf16>,
    return
  }
  func.func @transform_0(%arg0: i32) -> (i32, i32) {
    %c0_i32 = arith.constant 0 : i32
    %c0_i32_0 = arith.constant 0 : i32
    return %arg0, %c0_i32 : i32, i32
  }
  func.func @transform_1(%arg0: i32) -> (i32, i32) {
    %c0_i32 = arith.constant 0 : i32
    %c0_i32_0 = arith.constant 0 : i32
    %c0_i32_1 = arith.constant 0 : i32
    return %c0_i32, %c0_i32_0 : i32, i32
  }
  func.func @transform_2(%arg0: i32) -> (i32, i32) {
    %c0_i32 = arith.constant 0 : i32
    %c0_i32_0 = arith.constant 0 : i32
    %c0_i32_1 = arith.constant 0 : i32
    return %c0_i32, %c0_i32_0 : i32, i32
  }
  func.func @transform_3(%arg0: i32) -> (i32, i32) {
    %c0_i32 = arith.constant 0 : i32
    %c0_i32_0 = arith.constant 0 : i32
    %c0_i32_1 = arith.constant 0 : i32
    return %c0_i32, %c0_i32_0 : i32, i32
  }
  func.func @transform_4(%arg0: i32) -> (i32, i32) {
    %c0_i32 = arith.constant 0 : i32
    %c0_i32_0 = arith.constant 0 : i32
    %c0_i32_1 = arith.constant 0 : i32
    return %c0_i32, %c0_i32_0 : i32, i32
  }
  func.func @transform_5(%arg0: i32) -> (i32, i32) {
    %c0_i32 = arith.constant 0 : i32
    %c0_i32_0 = arith.constant 0 : i32
    %c0_i32_1 = arith.constant 0 : i32
    return %c0_i32, %c0_i32_0 : i32, i32
  }
  func.func @transform_6(%arg0: i32) -> (i32, i32) {
    %c0_i32 = arith.constant 0 : i32
    %c0_i32_0 = arith.constant 0 : i32
    %c0_i32_1 = arith.constant 0 : i32
    return %c0_i32, %c0_i32_0 : i32, i32
  }
  func.func @transform_7(%arg0: i32) -> (i32, i32) {
    %c0_i32 = arith.constant 0 : i32
    %c0_i32_0 = arith.constant 0 : i32
    return %arg0, %c0_i32 : i32, i32
  }
}

</mosaic_0001>

<bundles_post_ra>
// kernel: policy_network_forward.1
= control target key start
LH: loop header
LB: loop body
LE: loop exit
PB: predicated region body
PF: predicated region fallthrough
CT: control target
= control target key end

     0   :  { %12 = vsyncpa [#allocation3], 0  ;;  %s401_s0 = inlined_call_operand.vmem [shape: f32[16,16], index: 0, kind: input, shape index: {}]   ;;  %s402_s1 = inlined_call_operand.hbm [shape: bf16[16,32], index: 1, kind: input, shape index: {}]   ;;  %s403_s2 = inlined_call_operand.vmem [shape: f32[1,32], index: 2, kind: input, shape index: {}]   ;;  %s404_s3 = inlined_call_operand.vmem [shape: bf16[32,32], index: 3, kind: input, shape index: {}]   ;;  %s405_s4 = inlined_call_operand.vmem [shape: f32[1,32], index: 4, kind: input, shape index: {}]   ;;  %s406_s5 = inlined_call_operand.hbm [shape: bf16[32,128], index: 5, kind: input, shape index: {}]   ;;  %s407_s6 = inlined_call_operand.vmem [shape: f32[1,128], index: 6, kind: input, shape index: {}]   ;;  %s408_s7 = inlined_call_operand.vmem [shape: bf16[16,128], index: 7, kind: output, shape index: {}]  }
   0x1   :  { %s20_s26 = sshll.u32 %s402_s1, 4  ;;  %s21_s26 = int_to_ptr.hbm [resolvable:$true] %s20_s26 }
   0x2   :  { %13 = vsyncpa [#allocation5], 0  ;;  %s327_s27 = smov [#allocation2]   ;;  %s39_s8 = sshll.u32 %s406_s5, 4  ;;  %s40_s8 = int_to_ptr.hbm [resolvable:$true] %s39_s8 }
   0x3   :  { %s22_s28 = sshll.u32 %s327_s27, 4  ;;  %s328_s9 = smov 64   ;;  %s23_s28 = int_to_ptr.vmem [resolvable:$true] %s22_s28 }
   0x4   :  { %s329_s10 = smov 4   ;;  %s330_s11 = smov [#allocation4]  }
   0x5   :  { %28 = dma.hbm_to_vmem [thread:$0]  %s21_s26, 128, %s23_s28, [#allocation3], %s328_s9, %s328_s9, %s329_s10  }
   0x6   :  { %s41_s12 = sshll.u32 %s330_s11, 4  ;;  %s42_s12 = int_to_ptr.vmem [resolvable:$true] %s41_s12 }
   0x7   :  { %47 = dma.hbm_to_vmem [thread:$0]  %s40_s8, 256, %s42_s12, [#allocation5], %s328_s9, %s328_s9, %s329_s10  }
   0x8   :  { %323 = dma.done.wait [#allocation3], 128  }
   0x9   :  { %324 = vsyncadd [#allocation3], 4294967168 }
   0xa   :  { %325 = dma.done.wait [#allocation5], 256  }
   0xb   :  { %326 = vsyncadd [#allocation5], 4294967040  ;;  %v250_v0 = vld [vmem:[#allocation2] sm:$0xff]  ;;  %v60_v2 = vld [vmem:[%s401_s0 + $0x8] sm:$0xff]  ;;  %vm74_vm0 = vcmask 130048   ;;  %vm115_vm1 = vcmask 261120  }
   0xc   :  { %v59_v1 = vld [vmem:[%s401_s0] sm:$0xff]  ;;  %85 = vmatpush.bf16.msra.mxu0 %v250_v0  ;;  %v252_v4 = vld [vmem:[%s404_s3 + $0x8] sm:$0xff]  ;;  %v254_v14 = vld [vmem:[#allocation4 + $0x8] sm:$0xff] }
   0xd   :  { %v61_v3 = vpack.c.bf16 %v60_v2, %v59_v1  ;;  %125 = vmatpush.bf16.msra.mxu1 %v252_v4  ;;  %v251_v5 = vld [vmem:[%s404_s3] sm:$0xff]  ;;  %165 = vmatpush.bf16.msra.mxu2 %v254_v14  ;;  %v253_v15 = vld [vmem:[#allocation4] sm:$0xff] }
   0xe   :  { %v264_v7 = vld [vmem:[%s403_s2] ss:$0 sm:$0xff] }
   0xf   :  { %231 = vmatmul.msk.bf16.vlgmr.msra.gmra.mxu0 %vm74_vm0, %v61_v3  ;;  %v265_v17 = vld [vmem:[%s405_s4] ss:$0 sm:$0xff] }
  0x10   :  { %v266_v24 = vld [vmem:[%s407_s6] ss:$0 sm:$0xff] }
  0x11   :  { %126 = vmatpush.bf16.msra.mxu1 %v251_v5  ;;  %166 = vmatpush.bf16.msra.mxu2 %v253_v15 }
  0x8c   :  { %v87_v6 = vpop.f32.mrf.mxu0 }
  0x8d   :  { %v88_v8 = vadd.f32 %v264_v7, %v87_v6 }
  0x8f   :  { %v92_v11 = vmax.f32 %v88_v8, 0.0 }
  0x94   :  { %v89_v9 = vpop.f32.mrf.mxu0 }
  0x95   :  { %v90_v10 = vadd.f32 %v264_v7, %v89_v9 }
  0x97   :  { %v93_v12 = vmax.f32 %v90_v10, 0.0 }
  0x99   :  { %v94_v13 = vpack.c.bf16 %v93_v12, %v92_v11 }
  0x9b   :  { %240 = vmatmul.msk.bf16.vlgmr.msra.gmra.mxu1 %vm115_vm1, %v94_v13 }
 0x118   :  { %v128_v16 = vpop.f32.mrf.mxu1 }
 0x119   :  { %v129_v18 = vadd.f32 %v265_v17, %v128_v16 }
 0x11b   :  { %v133_v21 = vmax.f32 %v129_v18, 0.0 }
 0x120   :  { %v130_v19 = vpop.f32.mrf.mxu1 }
 0x121   :  { %v131_v20 = vadd.f32 %v265_v17, %v130_v19 }
 0x123   :  { %v134_v22 = vmax.f32 %v131_v20, 0.0 }
 0x125   :  { %v135_v23 = vpack.c.bf16 %v134_v22, %v133_v21 }
 0x127   :  { %249 = vmatmul.msk.bf16.vlgmr.msra.gmra.mxu2 %vm115_vm1, %v135_v23 }
 0x1aa   :  { %v168_v25 = vpop.f32.mrf.mxu2 }
 0x1ab   :  { %v169_v26 = vadd.f32 %v266_v24, %v168_v25 }
 0x1ad   :  { %173 = vmax.xlane.f32.xlu0 %v169_v26 }
 0x1b2   :  { %v170_v27 = vpop.f32.mrf.mxu2 }
 0x1b3   :  { %v171_v28 = vadd.f32 %v266_v24, %v170_v27 }
 0x1b5   :  { %175 = vmax.xlane.f32.xlu0 %v171_v28 }
 0x220   :  { %v174_v29 = vpop.xlane.xlu0 %173 }
 0x221   :  { %v177_v30 = vsub.f32 %v169_v26, %v174_v29 }
 0x223   :  { %v179_v31 = vmul.f32 1.442695, %v177_v30 }
 0x225   :  { %267 = vpow2.f32 %v179_v31 }
 0x228   :  { %v176_v32 = vpop.xlane.xlu0 %175 }
 0x229   :  { %v178_v33 = vsub.f32 %v171_v28, %v176_v32 }
 0x22b   :  { %v268_v34 = vpop.eup %267  ;;  %v181_v35 = vmul.f32 1.442695, %v178_v33 }
 0x22c   :  { %183 = vadd.xlane.f32.xlu1 %v268_v34 }
 0x22d   :  { %269 = vpow2.f32 %v181_v35 }
 0x233   :  { %v270_v36 = vpop.eup %269 }
 0x234   :  { %185 = vadd.xlane.f32.xlu1 %v270_v36 }
 0x29f   :  { %v184_v37 = vpop.xlane.xlu1 %183 }
 0x2a0   :  { %271 = vrcp.f32 %v184_v37  ;;  %v198_v46 = vand.u32 2147483648, %v184_v37  ;;  %vm192_vm3 = vweird.f32 %v184_v37  ;;  %v196_v47 = vand.u32 2147483647, %v184_v37 }
 0x2a2   :  { %v199_v53 = vor.u32 1.1754944e-38, %v198_v46  ;;  %vm197_vm6 = vcmp.eq.f32.partialorder %v196_v47, 8.507059e+37 }
 0x2a6   :  { %v272_v38 = vpop.eup %271 }
 0x2a7   :  { %v188_v39 = vmul.f32 %v272_v38, %v184_v37  ;;  %v186_v40 = vpop.xlane.xlu1 %185  ;;  %vm193_vm2 = vweird.f32 %v272_v38 }
 0x2a8   :  { %273 = vrcp.f32 %v186_v40  ;;  %vm194_vm4 = vmor %vm192_vm3, %vm193_vm2  ;;  %v213_v49 = vand.u32 2147483648, %v186_v40  ;;  %v211_v52 = vand.u32 2147483647, %v186_v40  ;;  %vm207_vm7 = vweird.f32 %v186_v40 }
 0x2a9   :  { %v189_v41 = vsub.f32 1.0, %v188_v39 }
 0x2aa   :  { %v214_v56 = vor.u32 1.1754944e-38, %v213_v49  ;;  %vm212_vm9 = vcmp.eq.f32.partialorder %v211_v52, 8.507059e+37 }
 0x2ab   :  { %v190_v42 = vmul.f32 %v272_v38, %v189_v41 }
 0x2ad   :  { %v191_v44 = vadd.f32 %v272_v38, %v190_v42 }
 0x2ae   :  { %v274_v43 = vpop.eup %273 }
 0x2af   :  { %v203_v45 = vmul.f32 %v274_v43, %v186_v40  ;;  %v195_v50 = vsel %vm194_vm4, %v272_v38, %v191_v44  ;;  %vm208_vm5 = vweird.f32 %v274_v43 }
 0x2b0   :  { %v200_v55 = vsel %vm197_vm6, %v199_v53, %v195_v50  ;;  %vm209_vm8 = vmor %vm207_vm7, %vm208_vm5 }
 0x2b1   :  { %v204_v48 = vsub.f32 1.0, %v203_v45  ;;  %v201_v59 = vmul.f32 %v268_v34, %v200_v55 }
 0x2b3   :  { %v205_v51 = vmul.f32 %v274_v43, %v204_v48 }
 0x2b5   :  { %v206_v54 = vadd.f32 %v274_v43, %v205_v51 }
 0x2b7   :  { %v210_v57 = vsel %vm209_vm8, %v274_v43, %v206_v54 }
 0x2b8   :  { %v215_v58 = vsel %vm212_vm9, %v214_v56, %v210_v57 }
 0x2b9   :  { %v216_v60 = vmul.f32 %v270_v36, %v215_v58 }
 0x2bb   :  { %v258_v61 = vpack.c.bf16 %v216_v60, %v201_v59 }
 0x2bd   :  { %259 = vst [vmem:[%s408_s7] sm:$0xff] %v258_v61  }
 0x2be   :  { %225 = vsyncpa [#allocation3], 1 }
 0x2bf   :  { %226 = vsyncpa [#allocation5], 1 }

</bundles_post_ra>
